<compile_context>
chip_gen: v7x
topology: tpu7x:2x2x1
jax: 0.10.0
libtpu: 0.0.40
codegen_flags: <defaults>
</compile_context>

<pallas_src>
import jax
import jax.numpy as jnp
from jax.experimental import pallas as pl
from jax.experimental.pallas import tpu as pltpu


def _cdiv(a, b):
    return -(-a // b)


def _round_up(x, m):
    return _cdiv(x, m) * m


def _swiglu_kernel(x_ref, w1_ref, w2_ref, w3_ref, o_ref, acc_ref):
    # x_ref : (tm, dim)     token tile (constant across the hidden axis)
    # w1_ref: (dim, th)     gate-projection tile for hidden tile h
    # w2_ref: (dim, th)     up-projection tile for hidden tile h
    # w3_ref: (th, dim)     down-projection tile for hidden tile h
    # o_ref : (tm, dim)     output tile (written on the last hidden step)
    # acc_ref: (tm, dim) f32 accumulator across hidden tiles
    h = pl.program_id(1)

    @pl.when(h == 0)
    def _():
        acc_ref[...] = jnp.zeros_like(acc_ref)

    x = x_ref[...]
    x1 = jnp.dot(x, w1_ref[...], preferred_element_type=jnp.float32)
    x2 = jnp.dot(x, w2_ref[...], preferred_element_type=jnp.float32)
    # silu(x1) * x2  (Swish with beta=1, matching F.silu), kept in f32.
    gated = (x1 * jax.nn.sigmoid(x1)) * x2
    acc_ref[...] += jnp.dot(gated.astype(w3_ref.dtype), w3_ref[...],
                            preferred_element_type=jnp.float32)

    @pl.when(h == pl.num_programs(1) - 1)
    def _():
        o_ref[...] = acc_ref[...].astype(o_ref.dtype)


def swiglu_pallas(x, w1t, w2t, w3t, *, tm=None, th=None, weight_buffers=None):
    """SwiGLU forward.

    x: (..., dim). w1t/w2t: (dim, hidden) = w1.weight.T / w2.weight.T.
    w3t: (hidden, dim) = w3.weight.T.
    tm / th override the token / hidden tile sizes. weight_buffers (>2) opts
    the weight streams into deeper pipelining for tiny-tm (decode) shapes.
    """
    orig_shape = x.shape
    dim = orig_shape[-1]
    hidden = w1t.shape[1]
    x2d = x.reshape(-1, dim)
    tokens = x2d.shape[0]

    x_bytes = jnp.dtype(x.dtype).itemsize
    w_bytes = jnp.dtype(w1t.dtype).itemsize

    # ---- generation-aware VMEM budget -------------------------------------
    try:
        vmem_cap = int(getattr(pltpu.get_tpu_info(), "vmem_capacity_bytes",
                               64 << 20))
    except Exception:  # pragma: no cover - conservative fallback
        vmem_cap = 64 << 20
    small_vmem = vmem_cap <= (80 << 20)       # v7x-class: 64 MiB per TensorCore
    vmem_budget = int(vmem_cap * 0.85)

    tm_pref = tm if tm is not None else (512 if small_vmem else 1024)
    th_pref = th if th is not None else (256 if small_vmem else 512)

    # ---- hidden tile: multiple of 128 lanes; zero-pad hidden if needed ----
    if hidden <= max(th_pref, 128):
        th_eff, hidden_pad = hidden, hidden
    else:
        base = max(128, (th_pref // 128) * 128)
        t = base
        while t >= 128 and hidden % t != 0:
            t -= 128
        if t >= 128:
            th_eff, hidden_pad = t, hidden
        else:
            # No friendly divisor: pad hidden up to a multiple of the tile.
            th_eff, hidden_pad = base, _round_up(hidden, base)
    n_h = hidden_pad // th_eff

    # ---- VMEM footprint model (double-buffered tiles + scratch) -----------
    def vmem_need(tm_, th_):
        return (2 * tm_ * dim * x_bytes          # x tile (2 buffers)
                + 2 * 2 * dim * th_ * w_bytes    # w1 + w2 tiles
                + 2 * th_ * dim * w_bytes        # w3 tile
                + 2 * tm_ * dim * x_bytes        # out tile
                + tm_ * dim * 4                  # f32 accumulator scratch
                + 4 * tm_ * th_ * 4)             # f32 intermediates

    # ---- token tile: balanced against the actual token count --------------
    tm_cap = min(tm_pref, _round_up(tokens, 8))
    # v7x has 2 TensorCores and only the "parallel" token axis is sharded
    # across them: ensure >= 2 token tiles when there is enough work.
    if small_vmem and tokens > 256 and _cdiv(tokens, tm_cap) < 2:
        tm_cap = _round_up(_cdiv(tokens, 2), 8)

    while True:
        n_tok = _cdiv(tokens, tm_cap)
        tm_eff = _round_up(_cdiv(tokens, n_tok), 8)
        if vmem_need(tm_eff, th_eff) <= vmem_budget or tm_cap <= 128:
            break
        tm_cap = max(128, tm_cap // 2)
    # Last resort for huge dim on small VMEM: shrink the hidden tile
    # (halving keeps it a multiple of 128 and a divisor of hidden_pad).
    while (vmem_need(tm_eff, th_eff) > vmem_budget and th_eff > 128
           and th_eff % 256 == 0):
        th_eff //= 2
        n_h = hidden_pad // th_eff

    padded_tokens = n_tok * tm_eff
    if padded_tokens != tokens:
        x2d = jnp.pad(x2d, ((0, padded_tokens - tokens), (0, 0)))
    if hidden_pad != hidden:
        # TODO(synk): hoist this zero-pad to weight-load time for models whose
        # hidden dim has no 128-multiple divisor (it is per-call HBM traffic).
        pad_h = hidden_pad - hidden
        w1t = jnp.pad(w1t, ((0, 0), (0, pad_h)))
        w2t = jnp.pad(w2t, ((0, 0), (0, pad_h)))
        w3t = jnp.pad(w3t, ((0, pad_h), (0, 0)))

    vmem_limit = int(max(32 << 20,
                         min(vmem_need(tm_eff, th_eff) + (16 << 20),
                             int(vmem_cap * 0.92))))

    grid = (padded_tokens // tm_eff, n_h)
    n_tok_tiles = grid[0]

    # Weights are re-streamed once per token tile; count that honestly.
    weight_bytes_total = (2 * dim * hidden_pad + hidden_pad * dim) * w_bytes
    cost = pl.CostEstimate(
        flops=6 * padded_tokens * dim * hidden_pad,
        transcendentals=padded_tokens * hidden_pad,
        bytes_accessed=(padded_tokens * dim * x_bytes        # x read
                        + n_tok_tiles * weight_bytes_total   # weight streaming
                        + padded_tokens * dim * x_bytes),    # output write
    )

    def _wspec(shape, index_map):
        if weight_buffers is not None and weight_buffers > 2:
            return pl.BlockSpec(shape, index_map,
                                pipeline_mode=pl.Buffered(weight_buffers))
        return pl.BlockSpec(shape, index_map)

    out = pl.pallas_call(
        _swiglu_kernel,
        out_shape=jax.ShapeDtypeStruct((padded_tokens, dim), x.dtype),
        grid_spec=pltpu.PrefetchScalarGridSpec(
            num_scalar_prefetch=0,
            grid=grid,
            in_specs=[
                pl.BlockSpec((tm_eff, dim), lambda i, h: (i, 0)),
                _wspec((dim, th_eff), lambda i, h: (0, h)),
                _wspec((dim, th_eff), lambda i, h: (0, h)),
                _wspec((th_eff, dim), lambda i, h: (h, 0)),
            ],
            out_specs=pl.BlockSpec((tm_eff, dim), lambda i, h: (i, 0)),
            scratch_shapes=[pltpu.VMEM((tm_eff, dim), jnp.float32)],
        ),
        compiler_params=pltpu.CompilerParams(
            dimension_semantics=("parallel", "arbitrary"),
            vmem_limit_bytes=vmem_limit,
        ),
        cost_estimate=cost,
    )(x2d, w1t, w2t, w3t)

    if padded_tokens != tokens:
        out = out[:tokens]
    return out.reshape(orig_shape)


def swiglu_ref(x, w1t, w2t, w3t):
    x1 = x @ w1t
    x2 = x @ w2t
    return (jax.nn.silu(x1) * x2) @ w3t


if __name__ == "__main__":
    # Small shapes consistent with the module: batch=2, seq=8, dim=32, hidden=64.
    batch, seq, dim, hidden = 2, 8, 32, 64

    key = jax.random.PRNGKey(0)
    kx, k1, k2, k3, kx2, kx3, kw = jax.random.split(key, 7)

    x = jax.random.normal(kx, (batch, seq, dim), dtype=jnp.float32)
    # PyTorch nn.Linear stores (out, in); we pass transposed layouts directly
    # (w1t/w2t = w1.weight.T, w3t = w3.weight.T) for row-major matmuls.
    w1t = jax.random.normal(k1, (dim, hidden), dtype=jnp.float32) * 0.05
    w2t = jax.random.normal(k2, (dim, hidden), dtype=jnp.float32) * 0.05
    w3t = jax.random.normal(k3, (hidden, dim), dtype=jnp.float32) * 0.05

    out = jax.block_until_ready(swiglu_pallas(x, w1t, w2t, w3t))
    ref = swiglu_ref(x, w1t, w2t, w3t)
    assert out.shape == (batch, seq, dim)
    assert jnp.allclose(out, ref, atol=1e-4, rtol=1e-4), "mismatch vs reference"

    # Remainder handling: token count not a multiple of the sublane/tile size.
    x_odd = jax.random.normal(kx2, (2, 5, dim), dtype=jnp.float32)
    out_odd = jax.block_until_ready(swiglu_pallas(x_odd, w1t, w2t, w3t))
    ref_odd = swiglu_ref(x_odd, w1t, w2t, w3t)
    assert out_odd.shape == (2, 5, dim)
    assert jnp.allclose(out_odd, ref_odd, atol=1e-4, rtol=1e-4), "odd-shape mismatch"

    # Hidden-reduction path: multiple hidden tiles accumulated in the f32 scratch.
    dim2, hidden2 = 128, 512
    w1b = jax.random.normal(jax.random.fold_in(kw, 1), (dim2, hidden2), jnp.float32) * 0.02
    w2b = jax.random.normal(jax.random.fold_in(kw, 2), (dim2, hidden2), jnp.float32) * 0.02
    w3b = jax.random.normal(jax.random.fold_in(kw, 3), (hidden2, dim2), jnp.float32) * 0.02
    x_b = jax.random.normal(kx3, (40, dim2), dtype=jnp.float32)
    out_b = jax.block_until_ready(swiglu_pallas(x_b, w1b, w2b, w3b, th=128))
    ref_b = swiglu_ref(x_b, w1b, w2b, w3b)
    assert jnp.allclose(out_b, ref_b, atol=1e-3, rtol=1e-3), "multi-tile mismatch"

    # Hidden-padding path: hidden with no 128-multiple divisor of the tile.
    hidden3 = 320
    w1c = w1b[:, :hidden3]
    w2c = w2b[:, :hidden3]
    w3c = w3b[:hidden3, :]
    out_c = jax.block_until_ready(swiglu_pallas(x_b, w1c, w2c, w3c, th=128))
    ref_c = swiglu_ref(x_b, w1c, w2c, w3c)
    assert jnp.allclose(out_c, ref_c, atol=1e-3, rtol=1e-3), "padded-hidden mismatch"

    print("KERNEL_OK")
</pallas_src>

<mosaic_0001>
module attributes {stable_mosaic.version = 11 : i64} {
  func.func @_swiglu_kernel(%arg0: i32, %arg1: i32, %arg2: memref<16x32xf32, #tpu.memory_space<vmem>>, %arg3: memref<32x64xf32, #tpu.memory_space<vmem>>, %arg4: memref<32x64xf32, #tpu.memory_space<vmem>>, %arg5: memref<64x32xf32, #tpu.memory_space<vmem>>, %arg6: memref<16x32xf32, #tpu.memory_space<vmem>>, %arg7: memref<16x32xf32, #tpu.memory_space<vmem>>) attributes {dimension_semantics = [#tpu.dimension_semantics<parallel>, #tpu.dimension_semantics<arbitrary>], iteration_bounds = array<i64: 1, 1>, scalar_prefetch = 0 : i64, scratch_operands = 1 : i64, tpu.core_type = #tpu.core_type<tc>, window_params = [{transform_indices = @transform_0, window_bounds = array<i64: 16, 32>}, {transform_indices = @transform_1, window_bounds = array<i64: 32, 64>}, {transform_indices = @transform_2, window_bounds = array<i64: 32, 64>}, {transform_indices = @transform_3, window_bounds = array<i64: 64, 32>}, {transform_indices = @transform_4, window_bounds = array<i64: 16, 32>}]} {
    %c0_i32 = arith.constant 0 : i32
    %0 = arith.cmpi eq, %arg1, %c0_i32 : i32
    %1 = arith.extui %0 : i1 to i32
    %c0_i32_0 = arith.constant 0 : i32
    %2 = arith.cmpi ne, %1, %c0_i32_0 : i32
    scf.if %2 {
      %cst_17 = arith.constant 0.000000e+00 : f32
      %23 = vector.broadcast %cst_17 : f32 to vector<16x32xf32>
      %c0_18 = arith.constant 0 : index
      %c0_19 = arith.constant 0 : index
      %24 = vector.load %arg7[%c0_18, %c0_19] : memref<16x32xf32, #tpu.memory_space<vmem>>, vector<16x32xf32>
      tpu.vector_store %arg7[%c0_18, %c0_19], %23 {strides = array<i32>} : memref<16x32xf32, #tpu.memory_space<vmem>>, vector<16x32xf32>,
    } else {
    }
    %c0 = arith.constant 0 : index
    %c0_1 = arith.constant 0 : index
    %3 = vector.load %arg2[%c0, %c0_1] : memref<16x32xf32, #tpu.memory_space<vmem>>, vector<16x32xf32>
    %c0_2 = arith.constant 0 : index
    %c0_3 = arith.constant 0 : index
    %4 = vector.load %arg3[%c0_2, %c0_3] : memref<32x64xf32, #tpu.memory_space<vmem>>, vector<32x64xf32>
    %cst = arith.constant dense<0.000000e+00> : vector<16x64xf32>
    %5 = tpu.matmul %3, %4, %cst {dimension_numbers = #tpu.dot_dimension_numbers<[1], [0], [0], [1], [0, 0, 1, 1], [], []>} : vector<16x32xf32>, vector<32x64xf32>, vector<16x64xf32> -> vector<16x64xf32>
    %c0_4 = arith.constant 0 : index
    %c0_5 = arith.constant 0 : index
    %6 = vector.load %arg4[%c0_4, %c0_5] : memref<32x64xf32, #tpu.memory_space<vmem>>, vector<32x64xf32>
    %cst_6 = arith.constant dense<0.000000e+00> : vector<16x64xf32>
    %7 = tpu.matmul %3, %6, %cst_6 {dimension_numbers = #tpu.dot_dimension_numbers<[1], [0], [0], [1], [0, 0, 1, 1], [], []>} : vector<16x32xf32>, vector<32x64xf32>, vector<16x64xf32> -> vector<16x64xf32>
    %8 = arith.negf %5 : vector<16x64xf32>
    %9 = math.exp %8 : vector<16x64xf32>
    %cst_7 = arith.constant 1.000000e+00 : f32
    %10 = vector.broadcast %cst_7 : f32 to vector<16x64xf32>
    %11 = arith.addf %10, %9 : vector<16x64xf32>
    %12 = arith.divf %10, %11 : vector<16x64xf32>
    %13 = arith.mulf %5, %12 : vector<16x64xf32>
    %14 = arith.mulf %13, %7 : vector<16x64xf32>
    %c0_8 = arith.constant 0 : index
    %c0_9 = arith.constant 0 : index
    %15 = vector.load %arg7[%c0_8, %c0_9] : memref<16x32xf32, #tpu.memory_space<vmem>>, vector<16x32xf32>
    %c0_10 = arith.constant 0 : index
    %c0_11 = arith.constant 0 : index
    %16 = vector.load %arg5[%c0_10, %c0_11] : memref<64x32xf32, #tpu.memory_space<vmem>>, vector<64x32xf32>
    %cst_12 = arith.constant dense<0.000000e+00> : vector<16x32xf32>
    %17 = tpu.matmul %14, %16, %cst_12 {dimension_numbers = #tpu.dot_dimension_numbers<[1], [0], [0], [1], [0, 0, 1, 1], [], []>} : vector<16x64xf32>, vector<64x32xf32>, vector<16x32xf32> -> vector<16x32xf32>
    %18 = arith.addf %15, %17 : vector<16x32xf32>
    %c0_13 = arith.constant 0 : index
    %c0_14 = arith.constant 0 : index
    %19 = vector.load %arg7[%c0_13, %c0_14] : memref<16x32xf32, #tpu.memory_space<vmem>>, vector<16x32xf32>
    tpu.vector_store %arg7[%c0_13, %c0_14], %18 {strides = array<i32>} : memref<16x32xf32, #tpu.memory_space<vmem>>, vector<16x32xf32>,
    %c0_i32_15 = arith.constant 0 : i32
    %20 = arith.cmpi eq, %arg1, %c0_i32_15 : i32
    %21 = arith.extui %20 : i1 to i32
    %c0_i32_16 = arith.constant 0 : i32
    %22 = arith.cmpi ne, %21, %c0_i32_16 : i32
    scf.if %22 {
      %c0_17 = arith.constant 0 : index
      %c0_18 = arith.constant 0 : index
      %23 = vector.load %arg7[%c0_17, %c0_18] : memref<16x32xf32, #tpu.memory_space<vmem>>, vector<16x32xf32>
      %c0_19 = arith.constant 0 : index
      %c0_20 = arith.constant 0 : index
      %24 = vector.load %arg6[%c0_19, %c0_20] : memref<16x32xf32, #tpu.memory_space<vmem>>, vector<16x32xf32>
      tpu.vector_store %arg6[%c0_19, %c0_20], %23 {strides = array<i32>} : memref<16x32xf32, #tpu.memory_space<vmem>>, vector<16x32xf32>,
    } else {
    }
    return
  }
  func.func @transform_0(%arg0: i32, %arg1: i32) -> (i32, i32) {
    %c0_i32 = arith.constant 0 : i32
    %c0_i32_0 = arith.constant 0 : i32
    return %arg0, %c0_i32 : i32, i32
  }
  func.func @transform_1(%arg0: i32, %arg1: i32) -> (i32, i32) {
    %c0_i32 = arith.constant 0 : i32
    %c0_i32_0 = arith.constant 0 : i32
    return %c0_i32, %arg1 : i32, i32
  }
  func.func @transform_2(%arg0: i32, %arg1: i32) -> (i32, i32) {
    %c0_i32 = arith.constant 0 : i32
    %c0_i32_0 = arith.constant 0 : i32
    return %c0_i32, %arg1 : i32, i32
  }
  func.func @transform_3(%arg0: i32, %arg1: i32) -> (i32, i32) {
    %c0_i32 = arith.constant 0 : i32
    %c0_i32_0 = arith.constant 0 : i32
    return %arg1, %c0_i32 : i32, i32
  }
  func.func @transform_4(%arg0: i32, %arg1: i32) -> (i32, i32) {
    %c0_i32 = arith.constant 0 : i32
    %c0_i32_0 = arith.constant 0 : i32
    return %arg0, %c0_i32 : i32, i32
  }
}

</mosaic_0001>

<bundles_post_ra>
// kernel: tpu_custom_call.1
= control target key start
LH: loop header
LB: loop body
LE: loop exit
PB: predicated region body
PF: predicated region fallthrough
CT: control target
= control target key end

     0   :  { %vm22_vm0 = vcmask 261120   ;;  %s571_s0 = inlined_call_operand.vmem [shape: f32[16,32], index: 0, kind: input, shape index: {}]   ;;  %s572_s1 = inlined_call_operand.vmem [shape: f32[32,64], index: 1, kind: input, shape index: {}]   ;;  %s573_s2 = inlined_call_operand.vmem [shape: f32[32,64], index: 2, kind: input, shape index: {}]   ;;  %s574_s3 = inlined_call_operand.vmem [shape: f32[64,32], index: 3, kind: input, shape index: {}]   ;;  %s575_s4 = inlined_call_operand.hbm [shape: f32[16,32], index: 4, kind: output, shape index: {}]  }
   0x1   :  { %v27_v0 = vld [vmem:[%s572_s1] sm:$0xff]  ;;  %v28_v1 = vld [vmem:[%s572_s1 + $0x8] sm:$0xff]  ;;  %v29_v2 = vld [vmem:[%s572_s1 + $0x10] sm:$0xff] }
   0x2   :  { %v398_v3 = vpack.c.bf16 %v28_v1, %v27_v0  ;;  %v30_v4 = vld [vmem:[%s572_s1 + $0x18] sm:$0xff]  ;;  %v25_v5 = vld [vmem:[%s571_s0] sm:$0xff]  ;;  %v114_v8 = vld [vmem:[%s573_s2 + $0x8] sm:$0xff] }
   0x3   :  { %v402_v6 = vpack.c.bf16 %v30_v4, %v29_v2  ;;  %365 = vmatprep.mubr.msk.f32.mxu1 %vm22_vm0, %v25_v5  ;;  %v113_v7 = vld [vmem:[%s573_s2] sm:$0xff] }
   0x4   :  { %399 = vmatprep.subr.bf16.mxu1 %v398_v3 }
   0x5   :  { %9 = vsyncpa [#allocation4], 0  ;;  %401 = vmatpush3.bf16.msra.mxu1 %v398_v3  ;;  %v406_v9 = vpack.c.bf16 %v114_v8, %v113_v7  ;;  %v115_v10 = vld [vmem:[%s573_s2 + $0x10] sm:$0xff]  ;;  %v116_v11 = vld [vmem:[%s573_s2 + $0x18] sm:$0xff]  ;;  %v466_v26 = vmov 0.0   ;;  %vm218_vm1 = vcmask 523264  }
   0x6   :  { %403 = vmatprep.subr.bf16.mxu1 %v402_v6  ;;  %v26_v12 = vld [vmem:[%s571_s0 + $0x8] sm:$0xff]  ;;  %v410_v13 = vpack.c.bf16 %v116_v11, %v115_v10  ;;  %v210_v14 = vld [vmem:[%s574_s3] sm:$0xff]  ;;  %v212_v17 = vld [vmem:[%s574_s3 + $0x10] sm:$0xff]  ;;  %24 = vst.msk [vmem:[#allocation2 + $0x8] sm:$0xff] %vm22_vm0, %v466_v26 }
   0x7   :  { %v211_v15 = vld [vmem:[%s574_s3 + $0x8] sm:$0xff]  ;;  %v213_v18 = vld [vmem:[%s574_s3 + $0x18] sm:$0xff]  ;;  %v214_v20 = vld [vmem:[%s574_s3 + $0x20] sm:$0xff]  ;;  %23 = vst.msk [vmem:[#allocation2] sm:$0xff] %vm22_vm0, %v466_v26 }
   0x8   :  { %v414_v16 = vpack.c.bf16 %v211_v15, %v210_v14  ;;  %v418_v19 = vpack.c.bf16 %v213_v18, %v212_v17  ;;  %v215_v21 = vld [vmem:[%s574_s3 + $0x28] sm:$0xff]  ;;  %v216_v23 = vld [vmem:[%s574_s3 + $0x30] sm:$0xff]  ;;  %v217_v24 = vld [vmem:[%s574_s3 + $0x38] sm:$0xff]  ;;  %s467_s3 = smov [#allocation3]  }
   0x9   :  { %405 = vmatpush3.bf16.msra.mxu1 %v402_v6  ;;  %v422_v22 = vpack.c.bf16 %v215_v21, %v214_v20  ;;  %v426_v25 = vpack.c.bf16 %v217_v24, %v216_v23  ;;  %s316_s22 = sshll.u32 %s467_s3, 4  ;;  %s317_s22 = int_to_ptr.vmem [resolvable:$true] %s316_s22 }
   0xa   :  { %407 = vmatprep.subr.bf16.mxu1 %v406_v9  ;;  %415 = vmatprep.subr.bf16.mxu0 %v414_v16  ;;  %s442_s23 = scalar_lea.vmem %s317_s22, 256  ;;  %p447_p1 = scmp.lt.s32.totalorder %s317_s22, %s317_s22 }
   0xb   :  { %417 = vmatpush3.bf16.msra.mxu0 %v414_v16  ;;  %p443_p0 = scmp.ne.s32.totalorder %s317_s22, %s442_s23  ;;  %p448_p2 = scmp.lt.s32.totalorder %s442_s23, %s442_s23 }
   0xc   :  { %366 = vmatmul.mubr.msk.f32.vlgmr.msra.gmra.mrb[0].mxu1 %vm22_vm0, %v26_v12  ;;  %419 = vmatprep.subr.bf16.mxu0 %v418_v19 }
   0xd   :  { %409 = vmatpush3.bf16.msra.mxu1 %v406_v9  ;;  %376 = vmatprep.mubr.msk.f32.mxu1 %vm22_vm0, %v25_v5  ;;  %v209_v43 = vld [vmem:[#allocation2 + $0x8] sm:$0xff]  ;;  %p449_p3 = por %p448_p2, %p447_p1 }
   0xe   :  { %411 = vmatprep.subr.bf16.mxu1 %v410_v13  ;;  %v208_v44 = vld [vmem:[#allocation2] sm:$0xff] }
   0xf   :  { %421 = vmatpush3.bf16.msra.mxu0 %v418_v19  ;;  %p450_p4 = pnand %p449_p3, %p443_p0 }
  0x10   :  { %423 = vmatprep.subr.bf16.mxu0 %v422_v22 }
  0x11   :  { %413 = vmatpush3.bf16.msra.mxu1 %v410_v13 }
  0x13   :  { %425 = vmatpush3.bf16.msra.mxu0 %v422_v22 }
  0x14   :  { %377 = vmatmul.mubr.msk.f32.vlgmr.msra.gmra.mrb[2].mxu1 %vm22_vm0, %v26_v12  ;;  %427 = vmatprep.subr.bf16.mxu0 %v426_v25 }
  0x17   :  { %429 = vmatpush3.bf16.msra.mxu0 %v426_v25 }
  0xdf   :  { %v367_v27 = vpop.f32.mrb[0].mxu1 }
  0xe0   :  { %v332_v28 = vmul.f32 -1.442695, %v367_v27  ;;  %v104_v29 = vpop.f32.mrb[1].mxu1 }
  0xe1   :  { %v331_v30 = vmul.f32 -1.442695, %v104_v29 }
  0xe2   :  { %434 = vpow2.f32 %v332_v28 }
  0xe3   :  { %436 = vpow2.f32 %v331_v30 }
  0xe7   :  { %v378_v31 = vpop.f32.mrb[2].mxu1 }
  0xe8   :  { %v183_v32 = vpop.f32.mrb[3].mxu1 }
  0xec   :  { %v435_v33 = vpop.eup %434 }
  0xed   :  { %v437_v34 = vpop.eup %436  ;;  %v199_v35 = vadd.f32 1.0, %v435_v33 }
  0xee   :  { %v198_v36 = vadd.f32 1.0, %v437_v34 }
  0xef   :  { %438 = vrcp.f32 %v199_v35 }
  0xf0   :  { %440 = vrcp.f32 %v198_v36 }
  0xf9   :  { %v439_v37 = vpop.eup %438 }
  0xfa   :  { %v441_v38 = vpop.eup %440  ;;  %v205_v39 = vmul.f32 %v439_v37, %v367_v27 }
  0xfb   :  { %v204_v40 = vmul.f32 %v441_v38, %v104_v29 }
  0xfc   :  { %v207_v41 = vmul.f32 %v378_v31, %v205_v39 }
  0xfd   :  { %v206_v42 = vmul.f32 %v204_v40, %v183_v32 }
  0xff   :  { %395 = vmatprep.mubr.msk.f32.mxu0 %vm218_vm1, %v206_v42 }
 0x100   :  { %396 = vmatmul.mubr.msk.f32.vlgmr.msra.gmra.mrb[0].mxu0 %vm218_vm1, %v207_v41 }
 0x1d3   :  { %v397_v45 = vpop.f32.mrb[0].mxu0 }
 0x1d4   :  { %v301_v46 = vadd.f32 %v397_v45, %v209_v43  ;;  %v291_v47 = vpop.f32.mrb[1].mxu0 }
 0x1d5   :  { %v300_v48 = vadd.f32 %v291_v47, %v208_v44 }
 0x1d6   :  { %303 = vst.msk [vmem:[#allocation2 + $0x8] sm:$0xff] %vm22_vm0, %v301_v46 }
 0x1d7   :  { %302 = vst.msk [vmem:[#allocation2] sm:$0xff] %vm22_vm0, %v300_v48 }
 0x1dd   :  { %v308_v49 = vld [vmem:[#allocation2 + $0x8] sm:$0xff] }
 0x1de   :  { %v307_v50 = vld [vmem:[#allocation2] sm:$0xff]  ;;  %310 = vst.msk [vmem:[#allocation3 + $0x8] sm:$0xff] %vm22_vm0, %v308_v49 }
 0x1df   :  { %309 = vst.msk [vmem:[#allocation3] sm:$0xff] %vm22_vm0, %v307_v50 }
 0x1e0   :  { %453 = shalt.err (!%p450_p4)
}
 0x1e1   :  { %s454_s26 = scalar_lea.hbm %s575_s4, 256 }
 0x1e2   :  { %p455_p5 = scmp.ne.s32.totalorder %s575_s4, %s454_s26  ;;  %p458_p6 = scmp.lt.u32.totalorder %s454_s26, %s575_s4 }
 0x1e4   :  { %p460_p7 = pnand %p458_p6, %p455_p5 }
 0x1e6   :  { %463 = shalt.err (!%p460_p7)
}
 0x1e7   :  { %s468_s30 = smov 128   ;;  %s469_s5 = smov 8  }
 0x1e8   :  { %322 = dma.vmem_to_hbm [thread:$0]  %s317_s22, 256, %s575_s4, [#allocation4], %s468_s30, %s468_s30, %s469_s5  }
 0x1e9   :  { %464 = dma.done.wait [#allocation4], 256  }
 0x1ea   :  { %465 = vsyncadd [#allocation4], 4294967040 }
 0x1eb   :  { %326 = vsyncpa [#allocation4], 1 }

</bundles_post_ra>
